<compile_context>
chip_gen: v7x
topology: tpu7x:2x2x1
jax: 0.10.0
libtpu: 0.0.40
codegen_flags: <defaults>
</compile_context>

<pallas_src>
import jax
import jax.numpy as jnp
from jax.experimental import pallas as pl
from jax.experimental.pallas import tpu as pltpu


def _norm_pool_kernel(x_ref, o_ref, acc_ref):
    # x_ref: (TR, hw_block) input tile; o_ref: (TR, 1); acc_ref: (TR, 1) f32.
    k = pl.program_id(1)

    @pl.when(k == 0)
    def _():
        acc_ref[...] = jnp.zeros_like(acc_ref)

    x = x_ref[...].astype(jnp.float32)            # no-op for f32 inputs
    acc_ref[...] += jnp.sum(x * x, axis=-1, keepdims=True)

    @pl.when(k == pl.num_programs(1) - 1)
    def _():
        # sqrt(H*W) * sqrt(mean(x^2)) == sqrt(sum(x^2))
        o_ref[...] = jnp.sqrt(acc_ref[...]).astype(o_ref.dtype)


def adaptive_norm_pool2d(x, *, target_block_bytes=4 * 1024 * 1024):
    """x: (N, C, H, W) -> (N, C, 1, 1), same dtype as x."""
    N, C, H, W = x.shape
    rows = N * C
    hw = H * W
    dtype = x.dtype
    itemsize = jnp.dtype(dtype).itemsize

    # Sublane packing granularity of the second-to-last dim: 8 (f32), 16 (bf16), ...
    sub = 8 * max(1, 4 // itemsize)

    # Size blocks by f32 working-set elements so the in-kernel f32 squares fit
    # regardless of input dtype (implicitly halves TR for sub-32-bit dtypes).
    target_elems = max(sub * 128, target_block_bytes // 4)

    # ---- spatial (reduction) tile -----------------------------------------
    if sub * hw <= target_elems:
        hw_block = hw                              # full spatial extent per step
    else:
        hw_block = max(128, ((target_elems // sub) // 128) * 128)
    hw_pad = pl.cdiv(hw, hw_block) * hw_block

    # ---- row tile -----------------------------------------------------------
    tr = max(sub, ((target_elems // hw_block) // sub) * sub)
    tr = min(tr, pl.cdiv(rows, sub) * sub)         # don't exceed (padded) rows
    rows_pad = pl.cdiv(rows, tr) * tr

    x2d = x.reshape(rows, hw)
    if rows_pad != rows or hw_pad != hw:
        # zero-padding is exact for a sum-of-squares reduction
        x2d = jnp.pad(x2d, ((0, rows_pad - rows), (0, hw_pad - hw)))

    grid = (rows_pad // tr, hw_pad // hw_block)

    cost = pl.CostEstimate(
        flops=2 * rows * hw,
        transcendentals=rows,
        bytes_accessed=rows * hw * itemsize + rows * itemsize,
    )

    out2d = pl.pallas_call(
        _norm_pool_kernel,
        out_shape=jax.ShapeDtypeStruct((rows_pad, 1), dtype),
        grid_spec=pltpu.PrefetchScalarGridSpec(
            num_scalar_prefetch=0,
            grid=grid,
            in_specs=[pl.BlockSpec((tr, hw_block), lambda i, k: (i, k))],
            out_specs=pl.BlockSpec((tr, 1), lambda i, k: (i, 0)),
            scratch_shapes=[pltpu.VMEM((tr, 1), jnp.float32)],
        ),
        compiler_params=pltpu.CompilerParams(
            dimension_semantics=("parallel", "arbitrary"),
            vmem_limit_bytes=32 * 1024 * 1024,
        ),
        cost_estimate=cost,
    )(x2d)

    return out2d[:rows].reshape(N, C, 1, 1)


def _reference(x):
    # Pure-JAX reference mirroring the PyTorch module.
    H, W = x.shape[2], x.shape[3]
    coef = jnp.sqrt(jnp.float32(H * W))
    pooled = jnp.mean(x.astype(jnp.float32) ** 2, axis=(2, 3), keepdims=True)
    return (coef * jnp.sqrt(pooled)).astype(x.dtype)


if __name__ == "__main__":
    key = jax.random.PRNGKey(0)

    # Primary small-shape check (matches the module's expected NCHW input).
    x = jax.random.normal(key, (2, 4, 16, 16), dtype=jnp.float32)
    out = adaptive_norm_pool2d(x)
    jax.block_until_ready(out)
    ref = _reference(x)
    assert out.shape == (2, 4, 1, 1), out.shape
    assert jnp.allclose(out, ref, atol=1e-5, rtol=1e-5)

    # Exercise row padding (rows not a multiple of 8) and multi-step hw
    # reduction + spatial padding (forced via a tiny block-byte target).
    k1, k2 = jax.random.split(key)
    x2 = jax.random.normal(k1, (3, 5, 16, 16), dtype=jnp.float32)
    out2 = adaptive_norm_pool2d(x2)
    jax.block_until_ready(out2)
    assert jnp.allclose(out2, _reference(x2), atol=1e-5, rtol=1e-5)

    x3 = jax.random.normal(k2, (2, 16, 64, 72), dtype=jnp.float32)
    out3 = adaptive_norm_pool2d(x3, target_block_bytes=64 * 1024)
    jax.block_until_ready(out3)
    assert jnp.allclose(out3, _reference(x3), atol=1e-4, rtol=1e-5)

    print("KERNEL_OK")
</pallas_src>

<mosaic_0001>
module attributes {stable_mosaic.version = 11 : i64} {
  func.func @_norm_pool_kernel(%arg0: i32, %arg1: i32, %arg2: memref<8x256xf32, #tpu.memory_space<vmem>>, %arg3: memref<8x1xf32, #tpu.memory_space<vmem>>, %arg4: memref<8x1xf32, #tpu.memory_space<vmem>>) attributes {dimension_semantics = [#tpu.dimension_semantics<parallel>, #tpu.dimension_semantics<arbitrary>], iteration_bounds = array<i64: 1, 1>, scalar_prefetch = 0 : i64, scratch_operands = 1 : i64, tpu.core_type = #tpu.core_type<tc>, window_params = [{transform_indices = @transform_0, window_bounds = array<i64: 8, 256>}, {transform_indices = @transform_1, window_bounds = array<i64: 8, 1>}]} {
    %c0_i32 = arith.constant 0 : i32
    %0 = arith.cmpi eq, %arg1, %c0_i32 : i32
    %1 = arith.extui %0 : i1 to i32
    %c0_i32_0 = arith.constant 0 : i32
    %2 = arith.cmpi ne, %1, %c0_i32_0 : i32
    scf.if %2 {
      %cst_8 = arith.constant 0.000000e+00 : f32
      %13 = vector.broadcast %cst_8 : f32 to vector<8x1xf32>
      %c0_9 = arith.constant 0 : index
      %c0_10 = arith.constant 0 : index
      %14 = vector.load %arg4[%c0_9, %c0_10] : memref<8x1xf32, #tpu.memory_space<vmem>>, vector<8x1xf32>
      tpu.vector_store %arg4[%c0_9, %c0_10], %13 {strides = array<i32>} : memref<8x1xf32, #tpu.memory_space<vmem>>, vector<8x1xf32>,
    } else {
    }
    %c0 = arith.constant 0 : index
    %c0_1 = arith.constant 0 : index
    %3 = vector.load %arg2[%c0, %c0_1] : memref<8x256xf32, #tpu.memory_space<vmem>>, vector<8x256xf32>
    %c0_2 = arith.constant 0 : index
    %c0_3 = arith.constant 0 : index
    %4 = vector.load %arg4[%c0_2, %c0_3] : memref<8x1xf32, #tpu.memory_space<vmem>>, vector<8x1xf32>
    %5 = arith.mulf %3, %3 : vector<8x256xf32>
    %cst = arith.constant dense<0.000000e+00> : vector<8xf32>
    %6 = vector.multi_reduction <add>, %5, %cst [1] : vector<8x256xf32> to vector<8xf32>
    %7 = vector.shape_cast %6 : vector<8xf32> to vector<8x1xf32>
    %8 = arith.addf %4, %7 : vector<8x1xf32>
    %c0_4 = arith.constant 0 : index
    %c0_5 = arith.constant 0 : index
    %9 = vector.load %arg4[%c0_4, %c0_5] : memref<8x1xf32, #tpu.memory_space<vmem>>, vector<8x1xf32>
    tpu.vector_store %arg4[%c0_4, %c0_5], %8 {strides = array<i32>} : memref<8x1xf32, #tpu.memory_space<vmem>>, vector<8x1xf32>,
    %c0_i32_6 = arith.constant 0 : i32
    %10 = arith.cmpi eq, %arg1, %c0_i32_6 : i32
    %11 = arith.extui %10 : i1 to i32
    %c0_i32_7 = arith.constant 0 : i32
    %12 = arith.cmpi ne, %11, %c0_i32_7 : i32
    scf.if %12 {
      %c0_8 = arith.constant 0 : index
      %c0_9 = arith.constant 0 : index
      %13 = vector.load %arg4[%c0_8, %c0_9] : memref<8x1xf32, #tpu.memory_space<vmem>>, vector<8x1xf32>
      %14 = math.sqrt %13 : vector<8x1xf32>
      %c0_10 = arith.constant 0 : index
      %c0_11 = arith.constant 0 : index
      %15 = vector.load %arg3[%c0_10, %c0_11] : memref<8x1xf32, #tpu.memory_space<vmem>>, vector<8x1xf32>
      tpu.vector_store %arg3[%c0_10, %c0_11], %14 {strides = array<i32>} : memref<8x1xf32, #tpu.memory_space<vmem>>, vector<8x1xf32>,
    } else {
    }
    return
  }
  func.func @transform_0(%arg0: i32, %arg1: i32) -> (i32, i32) {
    %c0_i32 = arith.constant 0 : i32
    return %arg0, %arg1 : i32, i32
  }
  func.func @transform_1(%arg0: i32, %arg1: i32) -> (i32, i32) {
    %c0_i32 = arith.constant 0 : i32
    %c0_i32_0 = arith.constant 0 : i32
    return %arg0, %c0_i32 : i32, i32
  }
}

</mosaic_0001>

<bundles_post_ra>
// kernel: tpu_custom_call.1
= control target key start
LH: loop header
LB: loop body
LE: loop exit
PB: predicated region body
PF: predicated region fallthrough
CT: control target
= control target key end

     0   :  { %6 = vsyncpa [#allocation4], 0  ;;  %s82_s6 = smov [#allocation3]   ;;  %s112_s0 = inlined_call_operand.hbm [shape: f32[8,256], index: 0, kind: input, shape index: {}]   ;;  %s113_s1 = inlined_call_operand.vmem [shape: f32[8,1], index: 1, kind: output, shape index: {}]  }
   0x1   :  { %s13_s7 = sshll.u32 %s82_s6, 4  ;;  %s58_s10 = scalar_lea.hbm %s112_s0, 256  ;;  %s14_s7 = int_to_ptr.vmem [resolvable:$true] %s13_s7 }
   0x2   :  { %p59_p0 = scmp.ne.s32.totalorder %s112_s0, %s58_s10  ;;  %p62_p1 = scmp.lt.u32.totalorder %s58_s10, %s112_s0 }
   0x4   :  { %p64_p2 = pnand %p62_p1, %p59_p0 }
   0x6   :  { %67 = shalt.err (!%p64_p2)
}
   0x7   :  { %s68_s15 = scalar_lea.vmem %s14_s7, 256  ;;  %p73_p4 = scmp.lt.s32.totalorder %s14_s7, %s14_s7 }
   0x8   :  { %p69_p3 = scmp.ne.s32.totalorder %s14_s7, %s68_s15  ;;  %p74_p5 = scmp.lt.s32.totalorder %s68_s15, %s68_s15 }
   0xa   :  { %p75_p6 = por %p74_p5, %p73_p4 }
   0xc   :  { %p76_p7 = pnand %p75_p6, %p69_p3 }
   0xe   :  { %79 = shalt.err (!%p76_p7)
}
   0xf   :  { %16 = dma.hbm_to_vmem [thread:$0]  %s112_s0, 256, %s14_s7, [#allocation4]  }
  0x10   :  { %80 = dma.done.wait [#allocation4], 256  }
  0x11   :  { %81 = vsyncadd [#allocation4], 4294967040  ;;  %vm24_vm0 = vcmask 7168   ;;  %v83_v0 = vmov 0.0   ;;  %v26_v1 = vld [vmem:[#allocation3] sm:$0xff]  ;;  %v27_v2 = vld [vmem:[#allocation3 + $0x8] sm:$0xff] }
  0x12   :  { %25 = vst.msk [vmem:[#allocation2] sm:$0xff] %vm24_vm0, %v83_v0  ;;  %v29_v3 = vmul.f32 %v26_v1, %v26_v1  ;;  %v30_v4 = vmul.f32 %v27_v2, %v27_v2 }
  0x14   :  { %v31_v5 = vadd.f32 %v30_v4, %v29_v3 }
  0x16   :  { %32 = vadd.xlane.f32.xlu0 %v31_v5 }
  0x19   :  { %v28_v6 = vld [vmem:[#allocation2] sm:$0xff] }
  0xa3   :  { %v33_v7 = vpop.xlane.xlu0 %32 }
  0xa4   :  { %v34_v8 = vadd.f32 %v33_v7, %v28_v6 }
  0xa6   :  { %36 = vst.msk [vmem:[#allocation2] sm:$0xff] %vm24_vm0, %v34_v8 }
  0xad   :  { %v40_v9 = vld [vmem:[#allocation2] sm:$0xff] }
  0xae   :  { %56 = vrsqrt.f32 %v40_v9  ;;  %vm43_vm1 = vcmp.eq.f32.partialorder %v40_v9, inf  ;;  %v46_v12 = vand.u32 2147483648, %v40_v9  ;;  %vm45_vm2 = vcmp.eq.f32.partialorder %v40_v9, 0.0 }
  0xb8   :  { %v57_v10 = vpop.eup %56 }
  0xb9   :  { %v42_v11 = vmul.f32 %v57_v10, %v40_v9 }
  0xbb   :  { %v44_v13 = vsel %vm43_vm1, %v40_v9, %v42_v11 }
  0xbc   :  { %v47_v14 = vsel %vm45_vm2, %v46_v12, %v44_v13 }
  0xbd   :  { %48 = vst.msk [vmem:[%s113_s1] sm:$0xff] %vm24_vm0, %v47_v14 }
  0xbe   :  { %53 = vsyncpa [#allocation4], 1 }

</bundles_post_ra>
